<compile_context>
chip_gen: v6e
topology: v6e:2x2x1
jax: 0.10.0
libtpu: 0.0.40
codegen_flags: <defaults>
</compile_context>

<pallas_src>
import functools

import jax
import jax.numpy as jnp
from jax.experimental import pallas as pl
from jax.experimental.pallas import tpu as pltpu


def _round_up(x: int, m: int) -> int:
    return ((x + m - 1) // m) * m


def _default_batch_tile(batch: int) -> int:
    # >= 2 independent batch tiles once the batch allows it (v7x dual TC),
    # capped at 512 rows so the f32 [TB, D] epilogue stays comfortably inside
    # VMEM / the register file on every generation.
    return max(8, min(512, _round_up(-(-batch // 2), 8)))


def reward_head_kernel(cls_ref, w1_ref, bw_ref, out_ref):
    # cls_ref: [TB, H] bf16  batch on sublanes, hidden on lanes
    # w1_ref:  [H, D]  bf16  grid-invariant, single-buffered
    # bw_ref:  [3, D]  f32   row 0 = b1, row 1 = w2, row 2 = b2 (broadcast)
    # out_ref: [TB, 1] f32   reward column for this batch tile

    # First linear on the MXU: bf16 x bf16 operands, f32 accumulation.
    h = jnp.dot(cls_ref[...], w1_ref[...], preferred_element_type=jnp.float32)
    # Bias (sublane broadcast of a [1, D] row) + ReLU on the VPU, all f32
    # (v5e's VPU has no bf16).
    h = jnp.maximum(h + bw_ref[0:1, :], 0.0)
    # Second linear has a single output unit: elementwise mul by the w2 row +
    # lane-axis (XLU) reduction instead of a degenerate N=1 MXU matmul.
    r = jnp.sum(h * bw_ref[1:2, :], axis=1, keepdims=True)          # [TB, 1]
    out_ref[...] = (r + bw_ref[2:3, 0:1]).astype(out_ref.dtype)


@functools.partial(jax.jit, static_argnames=("batch_tile",))
def reward_head(cls_embedding, w1, b1, w2, b2, *, batch_tile=None):
    """cls_embedding: [B, H] f32; w1: [H, D]; b1: [D]; w2: [D, 1]; b2: [1]."""
    B, H = cls_embedding.shape
    D = w1.shape[1]
    tb = batch_tile if batch_tile is not None else _default_batch_tile(B)
    b_pad = _round_up(B, tb)

    cls_p = cls_embedding
    if b_pad != B:
        # Padded rows compute relu(b1).w2 + b2 (garbage) and are sliced off.
        cls_p = jnp.pad(cls_p, ((0, b_pad - B), (0, 0)))
    cls_bf16 = cls_p.astype(jnp.bfloat16)          # bf16 MXU input
    w1_bf16 = w1.astype(jnp.bfloat16)

    # Grid-invariant, lane-major parameter pack: row 0 = b1, row 1 = w2,
    # row 2 = b2 broadcast.  One contiguous [3, D] f32 block (pads only the
    # sublane dim 3 -> 8 in VMEM), single-buffered.
    bw = jnp.stack(
        [b1.astype(jnp.float32),
         w2.reshape(D).astype(jnp.float32),
         jnp.broadcast_to(b2.reshape(()).astype(jnp.float32), (D,))],
        axis=0)

    grid = (b_pad // tb,)

    out = pl.pallas_call(
        reward_head_kernel,
        out_shape=jax.ShapeDtypeStruct((b_pad, 1), jnp.float32),
        grid_spec=pltpu.PrefetchScalarGridSpec(
            num_scalar_prefetch=0,
            grid=grid,
            in_specs=[
                # Activation tile: batch on sublanes, indexed by the grid.
                pl.BlockSpec((tb, H), lambda i: (i, 0)),
                # Grid-invariant weights: block index never changes, so a
                # second pipeline buffer would be dead VMEM -> single-buffer.
                pl.BlockSpec((H, D), lambda i: (0, 0),
                             pipeline_mode=pl.Buffered(1)),
                pl.BlockSpec((3, D), lambda i: (0, 0),
                             pipeline_mode=pl.Buffered(1)),
            ],
            out_specs=pl.BlockSpec((tb, 1), lambda i: (i, 0)),
        ),
        compiler_params=pltpu.CompilerParams(
            # Independent batch tiles -> shard across both TCs on v7x.
            dimension_semantics=("parallel",),
            # Explicit limit: valid on v7x (64 MiB physical / 32 MiB default
            # scoped) as well as v5e/v6e (128 MiB).
            vmem_limit_bytes=32 * 1024 * 1024),
    )(cls_bf16, w1_bf16, bw)

    # Drop batch padding; matches PyTorch `reward.squeeze()`.
    return jnp.squeeze(out[:B, 0])


def reference(cls_embedding, w1, b1, w2, b2):
    # Pure-JAX reference mirroring the kernel's numerics: bf16 matmul operands,
    # f32 accumulation, f32 epilogue (== the module's math up to the bf16 cast
    # that every TPU MXU path applies anyway).
    cls16 = cls_embedding.astype(jnp.bfloat16).astype(jnp.float32)
    w116 = w1.astype(jnp.bfloat16).astype(jnp.float32)
    h = jnp.dot(cls16, w116, precision=jax.lax.Precision.HIGHEST)
    h = jnp.maximum(h + b1, 0.0)
    return jnp.squeeze(jnp.sum(h * w2.reshape(-1), axis=-1) + b2[0])


if __name__ == "__main__":
    # B = batch of (prompt, response) pairs, H = encoder hidden size,
    # D = classifier hidden_dim (256 in the module).
    B, H, D = 8, 128, 256

    key = jax.random.PRNGKey(0)
    k_cls, k_w1, k_b1, k_w2, k_b2 = jax.random.split(key, 5)

    # Synthetic CLS embedding standing in for
    # encoder(input_ids, attention_mask).last_hidden_state[:, 0, :].
    cls_embedding = jax.random.normal(k_cls, (B, H), dtype=jnp.float32)

    # Classifier parameters (shapes from nn.Linear(H, D), nn.Linear(D, 1)).
    w1 = jax.random.normal(k_w1, (H, D), dtype=jnp.float32) * 0.05
    b1 = jax.random.normal(k_b1, (D,), dtype=jnp.float32) * 0.05
    w2 = jax.random.normal(k_w2, (D, 1), dtype=jnp.float32) * 0.05
    b2 = jax.random.normal(k_b2, (1,), dtype=jnp.float32) * 0.05

    reward = jax.block_until_ready(reward_head(cls_embedding, w1, b1, w2, b2))
    expected = reference(cls_embedding, w1, b1, w2, b2)

    assert reward.shape == (B,), reward.shape
    assert jnp.allclose(reward, expected, atol=2e-4, rtol=2e-4), (reward, expected)
    print("KERNEL_OK")
</pallas_src>

<mosaic_0001>
module attributes {stable_mosaic.version = 11 : i64} {
  func.func @reward_head_kernel(%arg0: i32, %arg1: memref<8x128xbf16, #tpu.memory_space<vmem>>, %arg2: memref<128x256xbf16, #tpu.memory_space<vmem>>, %arg3: memref<3x256xf32, #tpu.memory_space<vmem>>, %arg4: memref<8x1xf32, #tpu.memory_space<vmem>>) attributes {dimension_semantics = [#tpu.dimension_semantics<parallel>], iteration_bounds = array<i64: 1>, scalar_prefetch = 0 : i64, scratch_operands = 0 : i64, tpu.core_type = #tpu.core_type<tc>, window_params = [{transform_indices = @transform_0, window_bounds = array<i64: 8, 128>}, {pipeline_mode = #tpu.pipeline_mode<synchronous>, transform_indices = @transform_1, window_bounds = array<i64: 128, 256>}, {pipeline_mode = #tpu.pipeline_mode<synchronous>, transform_indices = @transform_2, window_bounds = array<i64: 3, 256>}, {transform_indices = @transform_3, window_bounds = array<i64: 8, 1>}]} {
    %c0 = arith.constant 0 : index
    %c0_0 = arith.constant 0 : index
    %0 = vector.load %arg1[%c0, %c0_0] : memref<8x128xbf16, #tpu.memory_space<vmem>>, vector<8x128xbf16>
    %c0_1 = arith.constant 0 : index
    %c0_2 = arith.constant 0 : index
    %1 = vector.load %arg2[%c0_1, %c0_2] : memref<128x256xbf16, #tpu.memory_space<vmem>>, vector<128x256xbf16>
    %cst = arith.constant dense<0.000000e+00> : vector<8x256xf32>
    %2 = tpu.matmul %0, %1, %cst {dimension_numbers = #tpu.dot_dimension_numbers<[1], [0], [0], [1], [0, 0, 1, 1], [], []>} : vector<8x128xbf16>, vector<128x256xbf16>, vector<8x256xf32> -> vector<8x256xf32>
    %c0_3 = arith.constant 0 : index
    %c0_4 = arith.constant 0 : index
    %3 = vector.load %arg3[%c0_3, %c0_4] : memref<3x256xf32, #tpu.memory_space<vmem>>, vector<1x256xf32>
    %4 = vector.broadcast %3 : vector<1x256xf32> to vector<8x256xf32>
    %5 = arith.addf %2, %4 : vector<8x256xf32>
    %cst_5 = arith.constant 0.000000e+00 : f32
    %6 = vector.broadcast %cst_5 : f32 to vector<8x256xf32>
    %7 = arith.maximumf %5, %6 : vector<8x256xf32>
    %c1 = arith.constant 1 : index
    %c0_6 = arith.constant 0 : index
    %8 = vector.load %arg3[%c1, %c0_6] : memref<3x256xf32, #tpu.memory_space<vmem>>, vector<1x256xf32>
    %9 = vector.broadcast %8 : vector<1x256xf32> to vector<8x256xf32>
    %10 = arith.mulf %7, %9 : vector<8x256xf32>
    %cst_7 = arith.constant dense<0.000000e+00> : vector<8xf32>
    %11 = vector.multi_reduction <add>, %10, %cst_7 [1] : vector<8x256xf32> to vector<8xf32>
    %12 = vector.shape_cast %11 : vector<8xf32> to vector<8x1xf32>
    %c2 = arith.constant 2 : index
    %c0_8 = arith.constant 0 : index
    %13 = vector.load %arg3[%c2, %c0_8] : memref<3x256xf32, #tpu.memory_space<vmem>>, vector<1x1xf32>
    %14 = vector.broadcast %13 : vector<1x1xf32> to vector<8x1xf32>
    %15 = arith.addf %12, %14 : vector<8x1xf32>
    %c0_9 = arith.constant 0 : index
    %c0_10 = arith.constant 0 : index
    %16 = vector.load %arg4[%c0_9, %c0_10] : memref<8x1xf32, #tpu.memory_space<vmem>>, vector<8x1xf32>
    tpu.vector_store %arg4[%c0_9, %c0_10], %15 {strides = array<i32>} : memref<8x1xf32, #tpu.memory_space<vmem>>, vector<8x1xf32>,
    return
  }
  func.func @transform_0(%arg0: i32) -> (i32, i32) {
    %c0_i32 = arith.constant 0 : i32
    %c0_i32_0 = arith.constant 0 : i32
    return %arg0, %c0_i32 : i32, i32
  }
  func.func @transform_1(%arg0: i32) -> (i32, i32) {
    %c0_i32 = arith.constant 0 : i32
    %c0_i32_0 = arith.constant 0 : i32
    %c0_i32_1 = arith.constant 0 : i32
    return %c0_i32, %c0_i32_0 : i32, i32
  }
  func.func @transform_2(%arg0: i32) -> (i32, i32) {
    %c0_i32 = arith.constant 0 : i32
    %c0_i32_0 = arith.constant 0 : i32
    %c0_i32_1 = arith.constant 0 : i32
    return %c0_i32, %c0_i32_0 : i32, i32
  }
  func.func @transform_3(%arg0: i32) -> (i32, i32) {
    %c0_i32 = arith.constant 0 : i32
    %c0_i32_0 = arith.constant 0 : i32
    return %arg0, %c0_i32 : i32, i32
  }
}

</mosaic_0001>

<bundles_post_ra>
// kernel: reward_head.1
= control target key start
LH: loop header
LB: loop body
LE: loop exit
PB: predicated region body
PF: predicated region fallthrough
CT: control target
= control target key end

     0   :  { %v240_v1 = vmov 0   ;;  %v34_v18 = vlaneseq  ;;  %vm191_vm0 = vcmask 7168   ;;  %s324_s1 = inlined_call_operand.vmem [shape: bf16[128,256], index: 1, kind: input, shape index: {}]   ;;  %s325_s0 = inlined_call_operand.vmem [shape: bf16[8,128], index: 0, kind: input, shape index: {}]   ;;  %s326_s2 = inlined_call_operand.vmem [shape: f32[3,256], index: 2, kind: input, shape index: {}]   ;;  %s327_s3 = inlined_call_operand.vmem [shape: f32[8,1], index: 3, kind: output, shape index: {}]  }
   0x1   :  { %v216_v0 = vld [vmem:[%s324_s1 + $0x74] ss:$8 sps:$4 sm:$0xff]   ;;  %156 = vmatprep.mubr.bf16.mxu0 %v240_v1  ;;  %v218_v2 = vld [vmem:[%s324_s1 + $0x70] ss:$8 sps:$4 sm:$0xff]   ;;  %v219_v3 = vld [vmem:[%s324_s1 + $0x64] ss:$8 sps:$4 sm:$0xff]  }
   0x2   :  { %124 = vmatprep.subr.bf16.mxu0 %v216_v0  ;;  %v221_v4 = vld [vmem:[%s324_s1 + $0x60] ss:$8 sps:$4 sm:$0xff]   ;;  %v222_v5 = vld [vmem:[%s324_s1 + $0x54] ss:$8 sps:$4 sm:$0xff]   ;;  %v224_v6 = vld [vmem:[%s324_s1 + $0x50] ss:$8 sps:$4 sm:$0xff]  }
   0x3   :  { %125 = vmatpush1.bf16.msra.mxu0 %v218_v2  ;;  %v225_v7 = vld [vmem:[%s324_s1 + $0x44] ss:$8 sps:$4 sm:$0xff]   ;;  %v227_v8 = vld [vmem:[%s324_s1 + $0x40] ss:$8 sps:$4 sm:$0xff]   ;;  %v228_v9 = vld [vmem:[%s324_s1 + $0x34] ss:$8 sps:$4 sm:$0xff]  }
   0x4   :  { %126 = vmatprep.subr.bf16.mxu0 %v219_v3  ;;  %v230_v10 = vld [vmem:[%s324_s1 + $0x30] ss:$8 sps:$4 sm:$0xff]   ;;  %v231_v11 = vld [vmem:[%s324_s1 + $0x24] ss:$8 sps:$4 sm:$0xff]   ;;  %v233_v12 = vld [vmem:[%s324_s1 + $0x20] ss:$8 sps:$4 sm:$0xff]  }
   0x5   :  { %v234_v13 = vld [vmem:[%s324_s1 + $0x14] ss:$8 sps:$4 sm:$0xff]   ;;  %v236_v14 = vld [vmem:[%s324_s1 + $0x10] ss:$8 sps:$4 sm:$0xff]   ;;  %v237_v15 = vld [vmem:[%s324_s1 + $0x4] ss:$8 sps:$4 sm:$0xff]  }
   0x6   :  { %v239_v16 = vld [vmem:[%s324_s1] ss:$8 sps:$4 sm:$0xff]   ;;  %v35_v19 = vshrl.u32 %v34_v18, 7 }
   0x7   :  { %127 = vmatpush1.bf16.msra.mxu0 %v221_v4  ;;  %v15_v17 = vld [vmem:[%s325_s0] sm:$0xf] }
   0x8   :  { %128 = vmatprep.subr.bf16.mxu0 %v222_v5  ;;  %v36_v20 = vsub.s32 0, %v35_v19  ;;  %v32_v21 = vld [vmem:[%s326_s2] ss:$4 sm:$0x3]  ;;  %v40_v22 = vsub.s32 1, %v35_v19 }
   0x9   :  { %v213_v26 = vld [vmem:[%s326_s2 + $0x1] ss:$4 sm:$0x3]  ;;  %v214_v39 = vld [vmem:[%s326_s2 + $0x2] ss:$0 sm:$0xff] }
   0xa   :  { %v37_v23 = vrot.slane %v32_v21, %v36_v20  ;;  %v41_v24 = vrot.slane %v32_v21, %v40_v22  ;;  %v173_v31 = vrot.slane %v213_v26, %v36_v20  ;;  %v177_v32 = vrot.slane %v213_v26, %v40_v22 }
   0xb   :  { %129 = vmatpush1.bf16.msra.mxu0 %v224_v6 }
   0xc   :  { %130 = vmatprep.subr.bf16.mxu0 %v225_v7 }
   0xf   :  { %131 = vmatpush1.bf16.msra.mxu0 %v227_v8 }
  0x10   :  { %132 = vmatprep.subr.bf16.mxu0 %v228_v9 }
  0x13   :  { %133 = vmatpush1.bf16.msra.mxu0 %v230_v10 }
  0x14   :  { %134 = vmatprep.subr.bf16.mxu0 %v231_v11 }
  0x17   :  { %135 = vmatpush1.bf16.msra.mxu0 %v233_v12 }
  0x18   :  { %136 = vmatprep.subr.bf16.mxu0 %v234_v13 }
  0x1b   :  { %137 = vmatpush1.bf16.msra.mxu0 %v236_v14 }
  0x1c   :  { %138 = vmatprep.subr.bf16.mxu0 %v237_v15 }
  0x1f   :  { %139 = vmatpush1.bf16.msra.mxu0 %v239_v16 }
  0x22   :  { %157 = vmatmul.mubr.bf16.vlgmr.msra.gmra.mxu0 %v15_v17 }
  0xe2   :  { %v158_v25 = vpop.f32.mrf.mxu0 }
  0xe3   :  { %v159_v27 = vadd.f32 %v158_v25, %v37_v23 }
  0xe4   :  { %v160_v28 = vpop.f32.mrf.mxu0 }
  0xe5   :  { %v165_v29 = vmax.f32 %v159_v27, 0.0  ;;  %v161_v30 = vadd.f32 %v160_v28, %v41_v24 }
  0xe6   :  { %v162_v33 = vpop.f32.mrf.mxu0 }
  0xe7   :  { %v166_v34 = vmax.f32 %v161_v30, 0.0  ;;  %v180_v36 = vmul.f32 %v173_v31, %v165_v29 }
  0xe8   :  { %v163_v35 = vpop.f32.mrf.mxu0 }
  0xe9   :  { %v181_v37 = vmul.f32 %v177_v32, %v166_v34 }
  0xeb   :  { %v182_v38 = vadd.f32 %v181_v37, %v180_v36 }
  0xed   :  { %183 = vadd.xlane.f32.xlu0 %v182_v38 }
 0x176   :  { %v184_v40 = vpop.xlane.xlu0 %183 }
 0x177   :  { %v190_v41 = vadd.f32 %v214_v39, %v184_v40 }
 0x179   :  { %192 = vst.msk [vmem:[%s327_s3] sm:$0xff] %vm191_vm0, %v190_v41 }

</bundles_post_ra>
